<compile_context>
chip_gen: v5e
topology: v5e:2x2
jax: 0.10.0
libtpu: 0.0.40
codegen_flags: <defaults>
</compile_context>

<pallas_src>
import functools

import jax
import jax.numpy as jnp
from jax.experimental import pallas as pl
from jax.experimental.pallas import tpu as pltpu

LN_EPS = 1e-5                         # nn.LayerNorm default
VMEM_LIMIT_BYTES = 48 * 1024 * 1024   # > v5e's 16 MiB default, < v7x's 64 MiB physical


def _round_up(x, m):
    return (x + m - 1) // m * m


def patch_embed_kernel(x_ref, w_ref, bgb_ref, o_ref, *, dim_valid):
    # x_ref: (tm, Kp)  w_ref: (Kp, Dp)  bgb_ref: (8, Dp) rows = [bias, gamma, beta]
    # MXU matmul in the operands' native dtype, f32 accumulation.
    y = jnp.dot(x_ref[...], w_ref[...], preferred_element_type=jnp.float32)
    bgb = bgb_ref[...]                       # f32
    y = y + bgb[0:1, :]

    # Single-pass LayerNorm statistics over the *valid* dim columns.  Padded
    # columns of y are exactly zero (padded W columns / bias / gamma / beta are
    # zero), so plain sums already equal the sums over the valid columns.
    inv_d = 1.0 / float(dim_valid)
    s1 = jnp.sum(y, axis=-1, keepdims=True)
    s2 = jnp.sum(y * y, axis=-1, keepdims=True)
    mean = s1 * inv_d
    var = jnp.maximum(s2 * inv_d - mean * mean, 0.0)
    y_hat = (y - mean) * jax.lax.rsqrt(var + LN_EPS)
    o_ref[...] = (y_hat * bgb[1:2, :] + bgb[2:3, :]).astype(o_ref.dtype)


@functools.partial(jax.jit, static_argnames=("patchsize", "tm", "optimized"))
def _patch_embed_impl(x, w, b, gamma, beta, patchsize, *, tm, optimized):
    B, C, H, W = x.shape
    p = patchsize
    nh, nw = H // p, W // p
    L = nh * nw
    chans, dim = w.shape
    assert chans == C * p * p, "weight K dim must equal C*p*p"

    # --- Unfold(kernel=p, stride=p) + rearrange('b dim length -> b length dim')
    #   feature flat index = c*p*p + kh*p + kw (channel-major, as nn.Unfold),
    #   patch order l = ph*nw + pw (row-major over patches).
    # With allow_input_fusion on operand 0 (and the whole wrapper jitted), XLA
    # may fuse this transpose/reshape/pad producer into the Pallas input DMA so
    # the (M, chans) patch matrix never round-trips HBM.
    xp = x.reshape(B, C, nh, p, nw, p)
    xp = jnp.transpose(xp, (0, 2, 4, 1, 3, 5))      # (B, nh, nw, C, p, p)
    patches = xp.reshape(B * L, chans)              # (M, chans)
    M = B * L

    # --- Hardware-friendly padding -------------------------------------------
    Kp = _round_up(chans, 128)   # no-op when chans % 128 == 0 (e.g. 3*16*16=768)
    Dp = _round_up(dim, 128)     # lane-dense output / LN lanes

    # Token tile: big enough to amortize per-grid-step overhead, clamped to a
    # multiple of the dtype's minimum sublane tile (8 f32 / 16 bf16 / 32 int8),
    # and split so the grid has >= 2 steps for v7x's two TensorCores.
    min_tile = 8 * max(1, 4 // jnp.dtype(x.dtype).itemsize)
    tm = max(min_tile, min(tm, _round_up(M, min_tile)))
    if M > min_tile and pl.cdiv(M, tm) < 2:
        tm = _round_up(pl.cdiv(M, 2), min_tile)
    Mp = _round_up(M, tm)

    if (Mp, Kp) != (M, chans):                      # skipped when already aligned
        patches = jnp.pad(patches, ((0, Mp - M), (0, Kp - chans)))
    w_p = jnp.zeros((Kp, Dp), w.dtype).at[:chans, :dim].set(w)
    # bias / gamma / beta packed into a single sublane-padded f32 operand.
    bgb = (jnp.zeros((8, Dp), jnp.float32)
           .at[0, :dim].set(b.astype(jnp.float32))
           .at[1, :dim].set(gamma.astype(jnp.float32))
           .at[2, :dim].set(beta.astype(jnp.float32)))

    kernel = functools.partial(patch_embed_kernel, dim_valid=dim)

    # Constant-index_map operands don't need double buffering.
    const_mode = dict(pipeline_mode=pl.Buffered(1)) if optimized else {}
    compiler_kwargs = dict(
        dimension_semantics=("parallel",),
        vmem_limit_bytes=VMEM_LIMIT_BYTES,
    )
    if optimized:
        # Allow XLA to fuse the unfold producer into the patch-matrix operand.
        compiler_kwargs["allow_input_fusion"] = [True, False, False]

    out = pl.pallas_call(
        kernel,
        out_shape=jax.ShapeDtypeStruct((Mp, Dp), x.dtype),
        grid_spec=pltpu.PrefetchScalarGridSpec(
            num_scalar_prefetch=0,
            grid=(Mp // tm,),
            in_specs=[
                pl.BlockSpec((tm, Kp), lambda i: (i, 0)),                # token tile
                pl.BlockSpec((Kp, Dp), lambda i: (0, 0), **const_mode),  # resident W
                pl.BlockSpec((8, Dp), lambda i: (0, 0), **const_mode),   # bias/gamma/beta
            ],
            out_specs=pl.BlockSpec((tm, Dp), lambda i: (i, 0)),
        ),
        compiler_params=pltpu.CompilerParams(**compiler_kwargs),
    )(patches, w_p, bgb)

    return out[:M, :dim].reshape(B, L, dim)


def patch_embed(x, w, b, gamma, beta, patchsize, *, tm=512):
    """x: (B, C, H, W) NCHW.  Returns (B, L, dim) with L = (H/p)*(W/p).

    tm=512 by default; with the raised VMEM limit, tm=1024 measures a few
    percent better for large M on v6e/v5e (sweep offline).
    """
    # TODO(synk): if model numerics permit, cast patches/W to bf16 before the
    # call (keeping f32 accumulation + f32 LN) to halve HBM traffic on the hot
    # x-tile stream.
    try:
        return _patch_embed_impl(x, w, b, gamma, beta, patchsize, tm=tm,
                                 optimized=True)
    except Exception:
        # Conservative fallback if this jax/libtpu rejects pl.Buffered(1)
        # single-buffering or allow_input_fusion; kernel math is identical.
        return _patch_embed_impl(x, w, b, gamma, beta, patchsize, tm=tm,
                                 optimized=False)


def reference(x, w, b, gamma, beta, patchsize):
    """Pure-JAX reference of the PyTorch forward for a correctness check."""
    B, C, H, W = x.shape
    p = patchsize
    nh, nw = H // p, W // p
    xp = x.reshape(B, C, nh, p, nw, p)
    xp = jnp.transpose(xp, (0, 2, 4, 1, 3, 5)).reshape(B, nh * nw, C * p * p)
    y = jnp.dot(xp, w, precision=jax.lax.Precision.HIGHEST) + b
    mean = jnp.mean(y, axis=-1, keepdims=True)
    var = jnp.mean((y - mean) ** 2, axis=-1, keepdims=True)
    return (y - mean) / jnp.sqrt(var + LN_EPS) * gamma + beta


if __name__ == "__main__":
    # Small shapes consistent with the module:
    #   batch=2, channels=4, spatial=16x16, patchsize=4 -> chans=64, L=16, dim=32
    B, C, H, W = 2, 4, 16, 16
    patchsize = 4
    dim = 32
    chans = patchsize * patchsize * C

    key = jax.random.PRNGKey(0)
    kx, kw, kb = jax.random.split(key, 3)
    x = jax.random.normal(kx, (B, C, H, W), dtype=jnp.float32)

    # Deterministic synthetic parameters (shapes from __init__):
    #   proj: Linear(chans, dim) -> weight (chans, dim) in x@W convention, bias (dim,)
    #   norm_layer: LayerNorm(dim) -> gamma/beta (dim,)
    w = jax.random.normal(kw, (chans, dim), dtype=jnp.float32) * 0.02
    b = jax.random.normal(kb, (dim,), dtype=jnp.float32) * 0.02
    gamma = jnp.ones((dim,), dtype=jnp.float32)
    beta = jnp.zeros((dim,), dtype=jnp.float32)

    out = patch_embed(x, w, b, gamma, beta, patchsize)
    out = jax.block_until_ready(out)

    ref = reference(x, w, b, gamma, beta, patchsize)
    assert out.shape == (B, (H // patchsize) * (W // patchsize), dim)
    assert jnp.allclose(out, ref, atol=2e-5, rtol=2e-5), "mismatch vs reference"

    print("KERNEL_OK")
</pallas_src>

<mosaic_0001>
module attributes {stable_mosaic.version = 11 : i64} {
  func.func @patch_embed_kernel(%arg0: i32, %arg1: memref<16x128xf32, #tpu.memory_space<vmem>>, %arg2: memref<128x128xf32, #tpu.memory_space<vmem>>, %arg3: memref<8x128xf32, #tpu.memory_space<vmem>>, %arg4: memref<16x128xf32, #tpu.memory_space<vmem>>) attributes {dimension_semantics = [#tpu.dimension_semantics<parallel>], iteration_bounds = array<i64: 2>, scalar_prefetch = 0 : i64, scratch_operands = 0 : i64, tpu.core_type = #tpu.core_type<tc>, window_params = [{transform_indices = @transform_0, window_bounds = array<i64: 16, 128>}, {pipeline_mode = #tpu.pipeline_mode<synchronous>, transform_indices = @transform_1, window_bounds = array<i64: 128, 128>}, {pipeline_mode = #tpu.pipeline_mode<synchronous>, transform_indices = @transform_2, window_bounds = array<i64: 8, 128>}, {transform_indices = @transform_3, window_bounds = array<i64: 16, 128>}]} {
    %c0 = arith.constant 0 : index
    %c0_0 = arith.constant 0 : index
    %0 = vector.load %arg1[%c0, %c0_0] : memref<16x128xf32, #tpu.memory_space<vmem>>, vector<16x128xf32>
    %c0_1 = arith.constant 0 : index
    %c0_2 = arith.constant 0 : index
    %1 = vector.load %arg2[%c0_1, %c0_2] : memref<128x128xf32, #tpu.memory_space<vmem>>, vector<128x128xf32>
    %cst = arith.constant dense<0.000000e+00> : vector<16x128xf32>
    %2 = tpu.matmul %0, %1, %cst {dimension_numbers = #tpu.dot_dimension_numbers<[1], [0], [0], [1], [0, 0, 1, 1], [], []>} : vector<16x128xf32>, vector<128x128xf32>, vector<16x128xf32> -> vector<16x128xf32>
    %c0_3 = arith.constant 0 : index
    %c0_4 = arith.constant 0 : index
    %3 = vector.load %arg3[%c0_3, %c0_4] : memref<8x128xf32, #tpu.memory_space<vmem>>, vector<8x128xf32>
    %4 = vector.extract_strided_slice %3 {offsets = [0, 0], sizes = [1, 128], strides = [1, 1]} : vector<8x128xf32> to vector<1x128xf32>
    %5 = vector.broadcast %4 : vector<1x128xf32> to vector<16x128xf32>
    %6 = arith.addf %2, %5 : vector<16x128xf32>
    %cst_5 = arith.constant dense<0.000000e+00> : vector<16xf32>
    %7 = vector.multi_reduction <add>, %6, %cst_5 [1] : vector<16x128xf32> to vector<16xf32>
    %8 = vector.shape_cast %7 : vector<16xf32> to vector<16x1xf32>
    %9 = arith.mulf %6, %6 : vector<16x128xf32>
    %cst_6 = arith.constant dense<0.000000e+00> : vector<16xf32>
    %10 = vector.multi_reduction <add>, %9, %cst_6 [1] : vector<16x128xf32> to vector<16xf32>
    %11 = vector.shape_cast %10 : vector<16xf32> to vector<16x1xf32>
    %cst_7 = arith.constant 3.125000e-02 : f32
    %12 = vector.broadcast %cst_7 : f32 to vector<16x1xf32>
    %13 = arith.mulf %8, %12 : vector<16x1xf32>
    %cst_8 = arith.constant 3.125000e-02 : f32
    %14 = vector.broadcast %cst_8 : f32 to vector<16x1xf32>
    %15 = arith.mulf %11, %14 : vector<16x1xf32>
    %16 = arith.mulf %13, %13 : vector<16x1xf32>
    %17 = arith.subf %15, %16 : vector<16x1xf32>
    %cst_9 = arith.constant 0.000000e+00 : f32
    %18 = vector.broadcast %cst_9 : f32 to vector<16x1xf32>
    %19 = arith.maximumf %17, %18 : vector<16x1xf32>
    %20 = vector.broadcast %13 : vector<16x1xf32> to vector<16x128xf32>
    %21 = arith.subf %6, %20 : vector<16x128xf32>
    %cst_10 = arith.constant 9.99999974E-6 : f32
    %22 = vector.broadcast %cst_10 : f32 to vector<16x1xf32>
    %23 = arith.addf %19, %22 : vector<16x1xf32>
    %24 = math.rsqrt %23 : vector<16x1xf32>
    %25 = vector.broadcast %24 : vector<16x1xf32> to vector<16x128xf32>
    %26 = arith.mulf %21, %25 : vector<16x128xf32>
    %27 = vector.extract_strided_slice %3 {offsets = [1, 0], sizes = [1, 128], strides = [1, 1]} : vector<8x128xf32> to vector<1x128xf32>
    %28 = vector.broadcast %27 : vector<1x128xf32> to vector<16x128xf32>
    %29 = arith.mulf %26, %28 : vector<16x128xf32>
    %30 = vector.extract_strided_slice %3 {offsets = [2, 0], sizes = [1, 128], strides = [1, 1]} : vector<8x128xf32> to vector<1x128xf32>
    %31 = vector.broadcast %30 : vector<1x128xf32> to vector<16x128xf32>
    %32 = arith.addf %29, %31 : vector<16x128xf32>
    %c0_11 = arith.constant 0 : index
    %c0_12 = arith.constant 0 : index
    %33 = vector.load %arg4[%c0_11, %c0_12] : memref<16x128xf32, #tpu.memory_space<vmem>>, vector<16x128xf32>
    tpu.vector_store %arg4[%c0_11, %c0_12], %32 {strides = array<i32>} : memref<16x128xf32, #tpu.memory_space<vmem>>, vector<16x128xf32>,
    return
  }
  func.func @transform_0(%arg0: i32) -> (i32, i32) {
    %c0_i32 = arith.constant 0 : i32
    %c0_i32_0 = arith.constant 0 : i32
    return %arg0, %c0_i32 : i32, i32
  }
  func.func @transform_1(%arg0: i32) -> (i32, i32) {
    %c0_i32 = arith.constant 0 : i32
    %c0_i32_0 = arith.constant 0 : i32
    %c0_i32_1 = arith.constant 0 : i32
    return %c0_i32, %c0_i32_0 : i32, i32
  }
  func.func @transform_2(%arg0: i32) -> (i32, i32) {
    %c0_i32 = arith.constant 0 : i32
    %c0_i32_0 = arith.constant 0 : i32
    %c0_i32_1 = arith.constant 0 : i32
    return %c0_i32, %c0_i32_0 : i32, i32
  }
  func.func @transform_3(%arg0: i32) -> (i32, i32) {
    %c0_i32 = arith.constant 0 : i32
    %c0_i32_0 = arith.constant 0 : i32
    return %arg0, %c0_i32 : i32, i32
  }
}

module attributes {stable_mosaic.version = 11 : i64} {
  func.func @patch_embed_kernel(%arg0: i32, %arg1: memref<16x128xf32, #tpu.memory_space<vmem>>, %arg2: memref<128x128xf32, #tpu.memory_space<vmem>>, %arg3: memref<8x128xf32, #tpu.memory_space<vmem>>, %arg4: memref<16x128xf32, #tpu.memory_space<vmem>>) attributes {dimension_semantics = [#tpu.dimension_semantics<parallel>], iteration_bounds = array<i64: 2>, scalar_prefetch = 0 : i64, scratch_operands = 0 : i64, tpu.core_type = #tpu.core_type<tc>, window_params = [{transform_indices = @transform_0, window_bounds = array<i64: 16, 128>}, {pipeline_mode = #tpu.pipeline_mode<synchronous>, transform_indices = @transform_1, window_bounds = array<i64: 128, 128>}, {pipeline_mode = #tpu.pipeline_mode<synchronous>, transform_indices = @transform_2, window_bounds = array<i64: 8, 128>}, {transform_indices = @transform_3, window_bounds = array<i64: 16, 128>}]} {
    %c0 = arith.constant 0 : index
    %c0_0 = arith.constant 0 : index
    %0 = vector.load %arg1[%c0, %c0_0] : memref<16x128xf32, #tpu.memory_space<vmem>>, vector<16x128xf32>
    %c0_1 = arith.constant 0 : index
    %c0_2 = arith.constant 0 : index
    %1 = vector.load %arg2[%c0_1, %c0_2] : memref<128x128xf32, #tpu.memory_space<vmem>>, vector<128x128xf32>
    %cst = arith.constant dense<0.000000e+00> : vector<16x128xf32>
    %2 = tpu.matmul %0, %1, %cst {dimension_numbers = #tpu.dot_dimension_numbers<[1], [0], [0], [1], [0, 0, 1, 1], [], []>} : vector<16x128xf32>, vector<128x128xf32>, vector<16x128xf32> -> vector<16x128xf32>
    %c0_3 = arith.constant 0 : index
    %c0_4 = arith.constant 0 : index
    %3 = vector.load %arg3[%c0_3, %c0_4] : memref<8x128xf32, #tpu.memory_space<vmem>>, vector<8x128xf32>
    %4 = vector.extract_strided_slice %3 {offsets = [0, 0], sizes = [1, 128], strides = [1, 1]} : vector<8x128xf32> to vector<1x128xf32>
    %5 = vector.broadcast %4 : vector<1x128xf32> to vector<16x128xf32>
    %6 = arith.addf %2, %5 : vector<16x128xf32>
    %cst_5 = arith.constant dense<0.000000e+00> : vector<16xf32>
    %7 = vector.multi_reduction <add>, %6, %cst_5 [1] : vector<16x128xf32> to vector<16xf32>
    %8 = vector.shape_cast %7 : vector<16xf32> to vector<16x1xf32>
    %9 = arith.mulf %6, %6 : vector<16x128xf32>
    %cst_6 = arith.constant dense<0.000000e+00> : vector<16xf32>
    %10 = vector.multi_reduction <add>, %9, %cst_6 [1] : vector<16x128xf32> to vector<16xf32>
    %11 = vector.shape_cast %10 : vector<16xf32> to vector<16x1xf32>
    %cst_7 = arith.constant 3.125000e-02 : f32
    %12 = vector.broadcast %cst_7 : f32 to vector<16x1xf32>
    %13 = arith.mulf %8, %12 : vector<16x1xf32>
    %cst_8 = arith.constant 3.125000e-02 : f32
    %14 = vector.broadcast %cst_8 : f32 to vector<16x1xf32>
    %15 = arith.mulf %11, %14 : vector<16x1xf32>
    %16 = arith.mulf %13, %13 : vector<16x1xf32>
    %17 = arith.subf %15, %16 : vector<16x1xf32>
    %cst_9 = arith.constant 0.000000e+00 : f32
    %18 = vector.broadcast %cst_9 : f32 to vector<16x1xf32>
    %19 = arith.maximumf %17, %18 : vector<16x1xf32>
    %20 = vector.broadcast %13 : vector<16x1xf32> to vector<16x128xf32>
    %21 = arith.subf %6, %20 : vector<16x128xf32>
    %cst_10 = arith.constant 9.99999974E-6 : f32
    %22 = vector.broadcast %cst_10 : f32 to vector<16x1xf32>
    %23 = arith.addf %19, %22 : vector<16x1xf32>
    %24 = math.rsqrt %23 : vector<16x1xf32>
    %25 = vector.broadcast %24 : vector<16x1xf32> to vector<16x128xf32>
    %26 = arith.mulf %21, %25 : vector<16x128xf32>
    %27 = vector.extract_strided_slice %3 {offsets = [1, 0], sizes = [1, 128], strides = [1, 1]} : vector<8x128xf32> to vector<1x128xf32>
    %28 = vector.broadcast %27 : vector<1x128xf32> to vector<16x128xf32>
    %29 = arith.mulf %26, %28 : vector<16x128xf32>
    %30 = vector.extract_strided_slice %3 {offsets = [2, 0], sizes = [1, 128], strides = [1, 1]} : vector<8x128xf32> to vector<1x128xf32>
    %31 = vector.broadcast %30 : vector<1x128xf32> to vector<16x128xf32>
    %32 = arith.addf %29, %31 : vector<16x128xf32>
    %c0_11 = arith.constant 0 : index
    %c0_12 = arith.constant 0 : index
    %33 = vector.load %arg4[%c0_11, %c0_12] : memref<16x128xf32, #tpu.memory_space<vmem>>, vector<16x128xf32>
    tpu.vector_store %arg4[%c0_11, %c0_12], %32 {strides = array<i32>} : memref<16x128xf32, #tpu.memory_space<vmem>>, vector<16x128xf32>,
    return
  }
  func.func @transform_0(%arg0: i32) -> (i32, i32) {
    %c0_i32 = arith.constant 0 : i32
    %c0_i32_0 = arith.constant 0 : i32
    return %arg0, %c0_i32 : i32, i32
  }
  func.func @transform_1(%arg0: i32) -> (i32, i32) {
    %c0_i32 = arith.constant 0 : i32
    %c0_i32_0 = arith.constant 0 : i32
    %c0_i32_1 = arith.constant 0 : i32
    return %c0_i32, %c0_i32_0 : i32, i32
  }
  func.func @transform_2(%arg0: i32) -> (i32, i32) {
    %c0_i32 = arith.constant 0 : i32
    %c0_i32_0 = arith.constant 0 : i32
    %c0_i32_1 = arith.constant 0 : i32
    return %c0_i32, %c0_i32_0 : i32, i32
  }
  func.func @transform_3(%arg0: i32) -> (i32, i32) {
    %c0_i32 = arith.constant 0 : i32
    %c0_i32_0 = arith.constant 0 : i32
    return %arg0, %c0_i32 : i32, i32
  }
}

</mosaic_0001>

<bundles_post_ra>
// kernel: _patch_embed_impl.2
= control target key start
LH: loop header
LB: loop body
LE: loop exit
PB: predicated region body
PF: predicated region fallthrough
CT: control target
= control target key end

     0   :  { %s690_s0 = inlined_call_operand.vmem [shape: f32[128,128], index: 0, kind: input, shape index: {}]   ;;  %s691_s1 = inlined_call_operand.vmem [shape: f32[8,128], index: 1, kind: input, shape index: {}]   ;;  %s692_s2 = inlined_call_operand.vmem [shape: f32[32,64], index: 2, kind: input, shape index: {}]   ;;  %s693_s3 = inlined_call_operand.<no memory space> [shape: f32[], index: 3, kind: input, shape index: {}]   ;;  %s694_s4 = inlined_call_operand.hbm [shape: f32[32,128], index: 4, kind: output, shape index: {}]  }
   0x1   :  { %v9_v0 = vstv %s693_s3 }
   0x2   :  { %10 = vsyncpa [#allocation8], 0 }
   0x3   :  { %12 = vsyncpa [#allocation8 + $0x1], 0  ;;  %s538_s17 = smov 0   ;;  %s540_s18 = smov 0  }
   0x4   :  { %s542_s19 = smov 0   ;;  %s544_s20 = smov 0  }
   0x5 LB: > { %s559_s21 = sadd.s32 4294967295, %s506_s20   ;;  %s369_s22 = sadd.s32 4294967294, %s506_s20   ;;  %s506_s20 = sphi %s544_s20, %s700_s20   ;;  %s502_s19 = sphi %s542_s19, %s699_s19   ;;  %s498_s18 = sphi %s540_s18, %s698_s18   ;;  %s494_s17 = sphi %s538_s17, %s697_s17  }
   0x6   : > { %s563_s23 = sadd.s32 1, %s506_s20   ;;  %s93_s24 = sadd.s32 1, %s502_s19 }
   0x7   : > { %s90_s25 = ssub.s32 %s506_s20, %s563_s23  ;;  %p103_p0 = scmp.ne.s32.totalorder %s502_s19, %s498_s18 }
   0x8   : > { %p91_p1 = scmp.eq.s32.totalorder %s90_s25, 0  ;;  %p104_p2 = scmp.eq.s32.totalorder %s559_s21, 1 }
   0x9   : > { %p109_p3 = scmp.ne.s32.totalorder %s498_s18, %s494_s17  ;;  %p110_p4 = scmp.eq.s32.totalorder %s369_s22, 1 }
   0xa   : > { %s574_s26 = scalar_select %p91_p1, %s502_s19, %s93_s24  }
   0xb   : > { %p576_p5 = por %p104_p2, %p103_p0  ;;  %p580_p6 = por %p110_p4, %p109_p3 }
   0xc   : > { %p372_p7 = scmp.ge.s32.totalorder %s506_s20, 1  ;;  %p143_p8 = scmp.lt.s32.totalorder %s506_s20, 3 }
   0xe   : > { %p144_p9 = pnand %p372_p7, %p143_p8 }
   0xf   : > { %s374_s15 = sshll.u32 (!%p144_p9), %s559_s21, 1  ;;  %s164_s12 = sand.u32 (!%p144_p9), 1, %s498_s18  }
  0x10   : > { %147 = sbr.rel (%p144_p9) target bundleno = 343 (0x157), region = 32  ;;  %p168_p10 = scmp.lt.s32.totalorder (!%p144_p9), %s374_s15, 3 }
  0x11   : > { %s373_s13 = sshll.u32 (!%p144_p9), %s164_s12, 4  ;;  %s382_s14 = sshll.u32 (!%p144_p9), %s559_s21, 4 }
  0x12   : > { %s166_s16 = scalar_lea.vmem (!%p144_p9), [#allocation7], %s373_s13  ;;  %s303_s25 = scalar_lea.hbm (!%p144_p9), %s694_s4, %s382_s14 }
  0x13   : > { %s306_s29 = sshll.u32 (!%p144_p9), %s303_s25, 4  ;;  %s292_s21 = scalar_lea.sflag (!%p144_p9), [#allocation8], %s164_s12  ;;  %s307_s29 = int_to_ptr.hbm [resolvable:$true] %s306_s29 }
  0x14   : > { %s458_s30 = sshra.s32 (!%p144_p9), %s307_s29, 4  ;;  %s464_s8 = scalar_lea.hbm (!%p144_p9), %s694_s4, 32  ;;  %s459_s30 = int_to_ptr.hbm [resolvable:$true] %s458_s30 }
  0x15   : > { %v211_v1 = vld [vmem:[%s690_s0 + $0x78] sm:$0xff]  ;;  %v210_v2 = vld [vmem:[%s690_s0 + $0x70] sm:$0xff]  ;;  %v209_v3 = vld [vmem:[%s690_s0 + $0x68] sm:$0xff]  ;;  %s702_s15 = smov (!%p168_p10, %s374_s15), 3  ;;  %v175_v12 = vlaneseq  ;;  %s460_s5 = scalar_lea.hbm %s459_s30, 16 }
  0x16   : > { %214 = vmatpush.msra.mxu0 %v211_v1  ;;  %383 = vmatpush.msra.mxu1 %v211_v1  ;;  %v208_v4 = vld [vmem:[%s690_s0 + $0x60] sm:$0xff]  ;;  %v207_v5 = vld [vmem:[%s690_s0 + $0x58] sm:$0xff]  ;;  %v206_v6 = vld [vmem:[%s690_s0 + $0x50] sm:$0xff]  ;;  %s375_s11 = sshll.u32 %s702_s15, 3  ;;  %s304_s15 = sshll.u32 %s166_s16, 4  ;;  %s305_s15 = int_to_ptr.vmem [resolvable:$true] %s304_s15 }
  0x17   : > { %v205_v7 = vld [vmem:[%s690_s0 + $0x48] sm:$0xff]  ;;  %v204_v8 = vld [vmem:[%s690_s0 + $0x40] sm:$0xff]  ;;  %v203_v9 = vld [vmem:[%s690_s0 + $0x38] sm:$0xff]  ;;  %v176_v15 = vand.u32 127, %v175_v12  ;;  %s171_s22 = scalar_lea.vmem %s692_s2, %s375_s11  ;;  %p461_p11 = scmp.ne.s32.totalorder %s459_s30, %s460_s5 }
  0x18   : > { %215 = vmatpush.msra.mxu0 %v210_v2  ;;  %384 = vmatpush.msra.mxu1 %v210_v2  ;;  %v202_v10 = vld [vmem:[%s690_s0 + $0x30] sm:$0xff]  ;;  %v201_v11 = vld [vmem:[%s690_s0 + $0x28] sm:$0xff]  ;;  %v200_v13 = vld [vmem:[%s690_s0 + $0x20] sm:$0xff]  ;;  %p465_p0 = scmp.lt.s32.totalorder %s459_s30, %s694_s4  ;;  %p466_p1 = scmp.lt.s32.totalorder %s464_s8, %s460_s5 }
  0x19   : > { %v199_v14 = vld [vmem:[%s690_s0 + $0x18] sm:$0xff]  ;;  %v198_v16 = vld [vmem:[%s690_s0 + $0x10] sm:$0xff]  ;;  %v197_v17 = vld [vmem:[%s690_s0 + $0x8] sm:$0xff]  ;;  %vm178_vm0 = vcmp.lt.s32.totalorder %v176_v15, 64  ;;  %p462_p12 = pnand %p461_p11, %p576_p5 }
  0x1a   : > { %216 = vmatpush.msra.mxu0 %v209_v3  ;;  %385 = vmatpush.msra.mxu1 %v209_v3  ;;  %v174_v18 = vld [vmem:[%s171_s22] sm:$0xff]  ;;  %v376_v19 = vld [vmem:[%s171_s22 + $0x8] sm:$0xff]  ;;  %p467_p2 = por %p466_p1, %p465_p0 }
  0x1b   : > { %v196_v20 = vld [vmem:[%s690_s0] sm:$0xff]  ;;  %v179_v21 = vsel %vm178_vm0, %v174_v18, %v9_v0  ;;  %v189_v22 = vsel %vm178_vm0, %v376_v19, %v9_v0  ;;  %p463_p13 = pneg %p462_p12 }
  0x1c   : > { %217 = vmatpush.msra.mxu0 %v208_v4  ;;  %386 = vmatpush.msra.mxu1 %v208_v4  ;;  %v649_v23 = vld [vmem:[%s691_s1] sm:$0xff] }
  0x1d   : > { %v213_v24 = vperm.slane %v649_v23, 0  ;;  %v283_v54 = vperm.slane %v649_v23, 1  ;;  %v286_v58 = vperm.slane %v649_v23, 2  ;;  %p468_p3 = pnand %p467_p2, %p463_p13 }
  0x1e   : > { %218 = vmatpush.msra.mxu0 %v207_v5  ;;  %387 = vmatpush.msra.mxu1 %v207_v5 }
  0x20   : > { %219 = vmatpush.msra.mxu0 %v206_v6  ;;  %388 = vmatpush.msra.mxu1 %v206_v6 }
  0x22   : > { %220 = vmatpush.msra.mxu0 %v205_v7  ;;  %389 = vmatpush.msra.mxu1 %v205_v7 }
  0x24   : > { %221 = vmatpush.msra.mxu0 %v204_v8  ;;  %390 = vmatpush.msra.mxu1 %v204_v8 }
  0x26   : > { %222 = vmatpush.msra.mxu0 %v203_v9  ;;  %391 = vmatpush.msra.mxu1 %v203_v9 }
  0x28   : > { %223 = vmatpush.msra.mxu0 %v202_v10  ;;  %392 = vmatpush.msra.mxu1 %v202_v10 }
  0x2a   : > { %224 = vmatpush.msra.mxu0 %v201_v11  ;;  %393 = vmatpush.msra.mxu1 %v201_v11 }
  0x2c   : > { %225 = vmatpush.msra.mxu0 %v200_v13  ;;  %394 = vmatpush.msra.mxu1 %v200_v13 }
  0x2e   : > { %226 = vmatpush.msra.mxu0 %v199_v14  ;;  %395 = vmatpush.msra.mxu1 %v199_v14 }
  0x30   : > { %227 = vmatpush.msra.mxu0 %v198_v16  ;;  %396 = vmatpush.msra.mxu1 %v198_v16 }
  0x32   : > { %228 = vmatpush.msra.mxu0 %v197_v17  ;;  %397 = vmatpush.msra.mxu1 %v197_v17 }
  0x34   : > { %229 = vmatpush.msra.mxu0 %v196_v20  ;;  %398 = vmatpush.msra.mxu1 %v196_v20 }
  0x35   : > { %230 = vmatmul.f32.vlgmr.msra.gmra.mxu0 %v179_v21  ;;  %233 = vmatmul.f32.vlgmr.msra.gmra.mxu1 %v189_v22 }
  0xb2   : > { %v231_v25 = vpop.f32.mrf.mxu0  ;;  %v234_v27 = vpop.f32.mrf.mxu1 }
  0xb3   : > { %v232_v26 = vadd.f32 %v231_v25, %v213_v24  ;;  %v235_v29 = vadd.f32 %v234_v27, %v213_v24 }
  0xb5   : > { %237 = vadd.xlane.f32.xlu0 %v232_v26  ;;  %v241_v28 = vmul.f32 %v232_v26, %v232_v26  ;;  %v242_v30 = vmul.f32 %v235_v29, %v235_v29 }
  0xb7   : > { %243 = vadd.xlane.f32.xlu1 %v241_v28 }
  0xbd   : > { %239 = vadd.xlane.f32.xlu0 %v235_v29 }
  0xbf   : > { %245 = vadd.xlane.f32.xlu1 %v242_v30 }
 0x128   : > { %v238_v31 = vpop.xlane.xlu0 %237 }
 0x129   : > { %v247_v32 = vmul.f32 0.03125, %v238_v31 }
 0x12a   : > { %v244_v33 = vpop.xlane.xlu1 %243 }
 0x12b   : > { %v251_v34 = vmul.f32 %v247_v32, %v247_v32  ;;  %v249_v35 = vmul.f32 0.03125, %v244_v33  ;;  %v257_v55 = vsub.f32 %v232_v26, %v247_v32 }
 0x12d   : > { %v253_v36 = vsub.f32 %v249_v35, %v251_v34 }
 0x12f   : > { %v255_v37 = vmax.f32 %v253_v36, 0.0 }
 0x130   : > { %v240_v38 = vpop.xlane.xlu0 %239 }
 0x131   : > { %v259_v39 = vadd.f32 1e-05, %v255_v37  ;;  %v248_v40 = vmul.f32 0.03125, %v240_v38 }
 0x132   : > { %v246_v41 = vpop.xlane.xlu1 %245 }
 0x133   : > { %440 = vrsqrt.f32 %v259_v39  ;;  %v252_v42 = vmul.f32 %v248_v40, %v248_v40  ;;  %v250_v43 = vmul.f32 0.03125, %v246_v41  ;;  %vm267_vm2 = vweird.f32 %v259_v39 }
 0x134   : > { %v258_v3 = vsub.f32 %v235_v29, %v248_v40 }
 0x135   : > { %v254_v44 = vsub.f32 %v250_v43, %v252_v42 }
 0x137   : > { %v256_v45 = vmax.f32 %v254_v44, 0.0 }
 0x139   : > { %v441_v46 = vpop.eup %440  ;;  %v260_v48 = vadd.f32 1e-05, %v256_v45 }
 0x13a   : > { %v262_v47 = vmul.f32 %v441_v46, %v259_v39  ;;  %vm268_vm1 = vweird.f32 %v441_v46 }
 0x13b   : > { %442 = vrsqrt.f32 %v260_v48  ;;  %vm269_vm3 = vmor %vm267_vm2, %vm268_vm1  ;;  %vm277_vm5 = vweird.f32 %v260_v48 }
 0x13c   : > { %v263_v49 = vmul.f32 %v441_v46, %v262_v47 }
 0x13e   : > { %v264_v50 = vmul.f32 0.5, %v263_v49 }
 0x140   : > { %v265_v51 = vsub.f32 1.5, %v264_v50 }
 0x141   : > { %v443_v52 = vpop.eup %442 }
 0x142   : > { %v266_v53 = vmul.f32 %v441_v46, %v265_v51  ;;  %v272_v56 = vmul.f32 %v443_v52, %v260_v48  ;;  %vm278_vm4 = vweird.f32 %v443_v52 }
 0x143   : > { %vm279_vm6 = vmor %vm277_vm5, %vm278_vm4 }
 0x144   : > { %v270_v57 = vsel %vm269_vm3, %v441_v46, %v266_v53  ;;  %v273_v60 = vmul.f32 %v443_v52, %v272_v56 }
 0x145   : > { %v281_v59 = vmul.f32 %v270_v57, %v257_v55 }
 0x146   : > { %v274_v62 = vmul.f32 0.5, %v273_v60 }
 0x147   : > { %v284_v61 = vmul.f32 %v283_v54, %v281_v59 }
 0x148   : > { %v275_v63 = vsub.f32 1.5, %v274_v62 }
 0x149   : > { %v287_v1 = vadd.f32 %v286_v58, %v284_v61 }
 0x14a   : > { %v276_v2 = vmul.f32 %v443_v52, %v275_v63 }
 0x14b   : > { %289 = vst [vmem:[%s166_s16] sm:$0xff] %v287_v1 }
 0x14c   : > { %v280_v4 = vsel %vm279_vm6, %v443_v52, %v276_v2 }
 0x14d   : > { %v282_v5 = vmul.f32 %v280_v4, %v258_v3 }
 0x14f   : > { %v285_v6 = vmul.f32 %v283_v54, %v282_v5 }
 0x151   : > { %v288_v7 = vadd.f32 %v286_v58, %v285_v6 }
 0x153   : > { %290 = vst [vmem:[%s166_s16 + $0x8] sm:$0xff] %v288_v7 }
 0x154   : > { %471 = shalt.err (!%p468_p3)
}
 0x155   : > { %s508_s11 = smov 128   ;;  %s509_s12 = smov 8  }
 0x156   : > { %399 = dma.vmem_to_hbm [thread:$0]  (%p576_p5), %s305_s15, 256, %s307_s29, %s292_s21, %s508_s11, %s508_s11, %s509_s12  }
 0x157 PF: > { %p405_p4 = scmp.ge.s32.totalorder %s506_s20, 2  ;;  %s321_s13 = sand.u32 1, %s494_s17  }
 0x158   : > { %s322_s14 = scalar_lea.sflag [#allocation8], %s321_s13 }
 0x159   : > { %p402_p7 = pnand %p405_p4, %p580_p6 }
 0x15b   : > { %p403_p8 = pneg %p402_p7 }
 0x15d   : > { %489 = dma.done.wait (%p403_p8), %s322_s14, 256  }
 0x15e   : > { %491 = vsyncadd (%p403_p8), %s322_s14, 4294967040  ;;  %p15_p9 = scmp.ge.s32.totalorder %s563_s23, 4   ;;  %s697_s17 = smov %s498_s18 }
 0x15f   : > { %s698_s18 = smov %s502_s19  ;;  %s699_s19 = smov %s574_s26 }
 0x160   : > { %s700_s20 = smov %s563_s23  ;;  %17 = sbr.rel (!%p15_p9) target bundleno = 5 (0x5), region = 69 }
 0x165   :  { %328 = vsyncpa [#allocation8], 1 }
 0x166   :  { %330 = vsyncpa [#allocation8 + $0x1], 1 }

// kernel: _patch_embed_impl.1
= control target key start
LH: loop header
LB: loop body
LE: loop exit
PB: predicated region body
PF: predicated region fallthrough
CT: control target
= control target key end

     0   :  { %8 = vsyncpa [#allocation3], 0  ;;  %s651_s0 = inlined_call_operand.vmem [shape: f32[32,128], index: 0, kind: input, shape index: {}]   ;;  %s652_s1 = inlined_call_operand.vmem [shape: f32[128,128], index: 1, kind: input, shape index: {}]   ;;  %s653_s2 = inlined_call_operand.vmem [shape: f32[8,128], index: 2, kind: input, shape index: {}]   ;;  %s654_s3 = inlined_call_operand.hbm [shape: f32[32,128], index: 3, kind: output, shape index: {}]  }
   0x1   :  { %10 = vsyncpa [#allocation3 + $0x1], 0  ;;  %s507_s12 = smov 0   ;;  %s509_s13 = smov 0  }
   0x2   :  { %s511_s14 = smov 0   ;;  %s513_s15 = smov 0  }
   0x3 LB: > { %s528_s16 = sadd.s32 4294967295, %s483_s15   ;;  %s347_s17 = sadd.s32 4294967294, %s483_s15   ;;  %s483_s15 = sphi %s513_s15, %s660_s15   ;;  %s479_s14 = sphi %s511_s14, %s659_s14   ;;  %s475_s13 = sphi %s509_s13, %s658_s13   ;;  %s471_s12 = sphi %s507_s12, %s657_s12  }
   0x4   : > { %s532_s18 = sadd.s32 1, %s483_s15   ;;  %s91_s19 = sadd.s32 1, %s479_s14 }
   0x5   : > { %s88_s20 = ssub.s32 %s483_s15, %s532_s18  ;;  %p101_p0 = scmp.ne.s32.totalorder %s479_s14, %s475_s13 }
   0x6   : > { %p89_p1 = scmp.eq.s32.totalorder %s88_s20, 0  ;;  %p102_p2 = scmp.eq.s32.totalorder %s528_s16, 1 }
   0x7   : > { %p107_p3 = scmp.ne.s32.totalorder %s475_s13, %s471_s12  ;;  %p108_p4 = scmp.eq.s32.totalorder %s347_s17, 1 }
   0x8   : > { %s543_s21 = scalar_select %p89_p1, %s479_s14, %s91_s19  }
   0x9   : > { %p545_p5 = por %p102_p2, %p101_p0  ;;  %p549_p6 = por %p108_p4, %p107_p3 }
   0xa   : > { %p350_p7 = scmp.ge.s32.totalorder %s483_s15, 1  ;;  %p141_p8 = scmp.lt.s32.totalorder %s483_s15, 3 }
   0xc   : > { %p142_p9 = pnand %p350_p7, %p141_p8 }
   0xd   : > { %s352_s19 = sshll.u32 (!%p142_p9), %s528_s16, 1  ;;  %s162_s27 = sand.u32 (!%p142_p9), 1, %s475_s13  }
   0xe   : > { %145 = sbr.rel (%p142_p9) target bundleno = 341 (0x155), region = 32  ;;  %p166_p10 = scmp.lt.s32.totalorder (!%p142_p9), %s352_s19, 3 }
   0xf   : > { %s351_s28 = sshll.u32 (!%p142_p9), %s162_s27, 4  ;;  %s359_s29 = sshll.u32 (!%p142_p9), %s528_s16, 4 }
  0x10   : > { %s164_s30 = scalar_lea.vmem (!%p142_p9), [#allocation2], %s351_s28  ;;  %s270_s16 = scalar_lea.sflag (!%p142_p9), [#allocation3], %s162_s27 }
  0x11   : > { %s282_s7 = sshll.u32 (!%p142_p9), %s164_s30, 4  ;;  %s283_s7 = int_to_ptr.vmem [resolvable:$true] %s282_s7 }
  0x13   : > { %v189_v0 = vld [vmem:[%s652_s1 + $0x78] sm:$0xff]  ;;  %v188_v1 = vld [vmem:[%s652_s1 + $0x70] sm:$0xff]  ;;  %v187_v2 = vld [vmem:[%s652_s1 + $0x68] sm:$0xff]  ;;  %s662_s19 = smov (!%p166_p10, %s352_s19), 3 }
  0x14   : > { %192 = vmatpush.msra.mxu0 %v189_v0  ;;  %360 = vmatpush.msra.mxu1 %v189_v0  ;;  %v186_v3 = vld [vmem:[%s652_s1 + $0x60] sm:$0xff]  ;;  %v185_v4 = vld [vmem:[%s652_s1 + $0x58] sm:$0xff]  ;;  %v184_v5 = vld [vmem:[%s652_s1 + $0x50] sm:$0xff]  ;;  %s353_s6 = sshll.u32 %s662_s19, 3 }
  0x15   : > { %v183_v6 = vld [vmem:[%s652_s1 + $0x48] sm:$0xff]  ;;  %v182_v7 = vld [vmem:[%s652_s1 + $0x40] sm:$0xff]  ;;  %v181_v8 = vld [vmem:[%s652_s1 + $0x38] sm:$0xff]  ;;  %s169_s20 = scalar_lea.vmem %s651_s0, %s353_s6  ;;  %s281_s6 = scalar_lea.hbm %s654_s3, %s359_s29 }
  0x16   : > { %193 = vmatpush.msra.mxu0 %v188_v1  ;;  %361 = vmatpush.msra.mxu1 %v188_v1  ;;  %v180_v9 = vld [vmem:[%s652_s1 + $0x30] sm:$0xff]  ;;  %v179_v10 = vld [vmem:[%s652_s1 + $0x28] sm:$0xff]  ;;  %v178_v11 = vld [vmem:[%s652_s1 + $0x20] sm:$0xff]  ;;  %s284_s8 = sshll.u32 %s281_s6, 4  ;;  %s285_s8 = int_to_ptr.hbm [resolvable:$true] %s284_s8 }
  0x17   : > { %v177_v12 = vld [vmem:[%s652_s1 + $0x18] sm:$0xff]  ;;  %v176_v13 = vld [vmem:[%s652_s1 + $0x10] sm:$0xff]  ;;  %v175_v14 = vld [vmem:[%s652_s1 + $0x8] sm:$0xff]  ;;  %s435_s9 = sshra.s32 %s285_s8, 4  ;;  %s436_s9 = int_to_ptr.hbm [resolvable:$true] %s435_s9 }
  0x18   : > { %194 = vmatpush.msra.mxu0 %v187_v2  ;;  %362 = vmatpush.msra.mxu1 %v187_v2  ;;  %v174_v15 = vld [vmem:[%s652_s1] sm:$0xff]  ;;  %v173_v17 = vld [vmem:[%s169_s20 + $0x8] sm:$0xff]  ;;  %s437_s10 = scalar_lea.hbm %s436_s9, 16  ;;  %p442_p0 = scmp.lt.s32.totalorder %s436_s9, %s654_s3 }
  0x19   : > { %v172_v16 = vld [vmem:[%s169_s20] sm:$0xff]  ;;  %p438_p11 = scmp.ne.s32.totalorder %s436_s9, %s437_s10  ;;  %s441_s20 = scalar_lea.hbm %s654_s3, 32 }
  0x1a   : > { %195 = vmatpush.msra.mxu0 %v186_v3  ;;  %363 = vmatpush.msra.mxu1 %v186_v3  ;;  %v610_v18 = vld [vmem:[%s653_s2] sm:$0xff]  ;;  %p443_p1 = scmp.lt.s32.totalorder %s441_s20, %s437_s10 }
  0x1b   : > { %v191_v19 = vperm.slane %v610_v18, 0  ;;  %v261_v49 = vperm.slane %v610_v18, 1  ;;  %v264_v53 = vperm.slane %v610_v18, 2  ;;  %p439_p12 = pnand %p438_p11, %p545_p5 }
  0x1c   : > { %196 = vmatpush.msra.mxu0 %v185_v4  ;;  %364 = vmatpush.msra.mxu1 %v185_v4  ;;  %p444_p2 = por %p443_p1, %p442_p0 }
  0x1d   : > { %p440_p13 = pneg %p439_p12 }
  0x1e   : > { %197 = vmatpush.msra.mxu0 %v184_v5  ;;  %365 = vmatpush.msra.mxu1 %v184_v5 }
  0x1f   : > { %p445_p3 = pnand %p444_p2, %p440_p13 }
  0x20   : > { %198 = vmatpush.msra.mxu0 %v183_v6  ;;  %366 = vmatpush.msra.mxu1 %v183_v6 }
  0x22   : > { %199 = vmatpush.msra.mxu0 %v182_v7  ;;  %367 = vmatpush.msra.mxu1 %v182_v7 }
  0x24   : > { %200 = vmatpush.msra.mxu0 %v181_v8  ;;  %368 = vmatpush.msra.mxu1 %v181_v8 }
  0x26   : > { %201 = vmatpush.msra.mxu0 %v180_v9  ;;  %369 = vmatpush.msra.mxu1 %v180_v9 }
  0x28   : > { %202 = vmatpush.msra.mxu0 %v179_v10  ;;  %370 = vmatpush.msra.mxu1 %v179_v10 }
  0x2a   : > { %203 = vmatpush.msra.mxu0 %v178_v11  ;;  %371 = vmatpush.msra.mxu1 %v178_v11 }
  0x2c   : > { %204 = vmatpush.msra.mxu0 %v177_v12  ;;  %372 = vmatpush.msra.mxu1 %v177_v12 }
  0x2e   : > { %205 = vmatpush.msra.mxu0 %v176_v13  ;;  %373 = vmatpush.msra.mxu1 %v176_v13 }
  0x30   : > { %206 = vmatpush.msra.mxu0 %v175_v14  ;;  %374 = vmatpush.msra.mxu1 %v175_v14 }
  0x32   : > { %207 = vmatpush.msra.mxu0 %v174_v15  ;;  %375 = vmatpush.msra.mxu1 %v174_v15 }
  0x33   : > { %208 = vmatmul.f32.vlgmr.msra.gmra.mxu0 %v172_v16  ;;  %211 = vmatmul.f32.vlgmr.msra.gmra.mxu1 %v173_v17 }
  0xb0   : > { %v209_v20 = vpop.f32.mrf.mxu0  ;;  %v212_v22 = vpop.f32.mrf.mxu1 }
  0xb1   : > { %v210_v21 = vadd.f32 %v209_v20, %v191_v19  ;;  %v213_v24 = vadd.f32 %v212_v22, %v191_v19 }
  0xb3   : > { %215 = vadd.xlane.f32.xlu0 %v210_v21  ;;  %v219_v23 = vmul.f32 %v210_v21, %v210_v21  ;;  %v220_v25 = vmul.f32 %v213_v24, %v213_v24 }
  0xb5   : > { %221 = vadd.xlane.f32.xlu1 %v219_v23 }
  0xbb   : > { %217 = vadd.xlane.f32.xlu0 %v213_v24 }
  0xbd   : > { %223 = vadd.xlane.f32.xlu1 %v220_v25 }
 0x126   : > { %v216_v26 = vpop.xlane.xlu0 %215 }
 0x127   : > { %v225_v27 = vmul.f32 0.03125, %v216_v26 }
 0x128   : > { %v222_v28 = vpop.xlane.xlu1 %221 }
 0x129   : > { %v229_v29 = vmul.f32 %v225_v27, %v225_v27  ;;  %v227_v30 = vmul.f32 0.03125, %v222_v28  ;;  %v235_v50 = vsub.f32 %v210_v21, %v225_v27 }
 0x12b   : > { %v231_v31 = vsub.f32 %v227_v30, %v229_v29 }
 0x12d   : > { %v233_v32 = vmax.f32 %v231_v31, 0.0 }
 0x12e   : > { %v218_v33 = vpop.xlane.xlu0 %217 }
 0x12f   : > { %v237_v34 = vadd.f32 1e-05, %v233_v32  ;;  %v226_v35 = vmul.f32 0.03125, %v218_v33 }
 0x130   : > { %v224_v36 = vpop.xlane.xlu1 %223 }
 0x131   : > { %417 = vrsqrt.f32 %v237_v34  ;;  %v230_v37 = vmul.f32 %v226_v35, %v226_v35  ;;  %v228_v38 = vmul.f32 0.03125, %v224_v36  ;;  %vm245_vm1 = vweird.f32 %v237_v34 }
 0x132   : > { %v236_v61 = vsub.f32 %v213_v24, %v226_v35 }
 0x133   : > { %v232_v39 = vsub.f32 %v228_v38, %v230_v37 }
 0x135   : > { %v234_v40 = vmax.f32 %v232_v39, 0.0 }
 0x137   : > { %v418_v41 = vpop.eup %417  ;;  %v238_v43 = vadd.f32 1e-05, %v234_v40 }
 0x138   : > { %v240_v42 = vmul.f32 %v418_v41, %v237_v34  ;;  %vm246_vm0 = vweird.f32 %v418_v41 }
 0x139   : > { %419 = vrsqrt.f32 %v238_v43  ;;  %vm247_vm2 = vmor %vm245_vm1, %vm246_vm0  ;;  %vm255_vm4 = vweird.f32 %v238_v43 }
 0x13a   : > { %v241_v44 = vmul.f32 %v418_v41, %v240_v42 }
 0x13c   : > { %v242_v45 = vmul.f32 0.5, %v241_v44 }
 0x13e   : > { %v243_v46 = vsub.f32 1.5, %v242_v45 }
 0x13f   : > { %v420_v47 = vpop.eup %419 }
 0x140   : > { %v244_v48 = vmul.f32 %v418_v41, %v243_v46  ;;  %v250_v51 = vmul.f32 %v420_v47, %v238_v43  ;;  %vm256_vm3 = vweird.f32 %v420_v47 }
 0x141   : > { %vm257_vm5 = vmor %vm255_vm4, %vm256_vm3 }
 0x142   : > { %v248_v52 = vsel %vm247_vm2, %v418_v41, %v244_v48  ;;  %v251_v55 = vmul.f32 %v420_v47, %v250_v51 }
 0x143   : > { %v259_v54 = vmul.f32 %v248_v52, %v235_v50 }
 0x144   : > { %v252_v57 = vmul.f32 0.5, %v251_v55 }
 0x145   : > { %v262_v56 = vmul.f32 %v261_v49, %v259_v54 }
 0x146   : > { %v253_v58 = vsub.f32 1.5, %v252_v57 }
 0x147   : > { %v265_v59 = vadd.f32 %v264_v53, %v262_v56 }
 0x148   : > { %v254_v60 = vmul.f32 %v420_v47, %v253_v58 }
 0x149   : > { %267 = vst [vmem:[%s164_s30] sm:$0xff] %v265_v59 }
 0x14a   : > { %v258_v62 = vsel %vm257_vm5, %v420_v47, %v254_v60 }
 0x14b   : > { %v260_v63 = vmul.f32 %v258_v62, %v236_v61 }
 0x14d   : > { %v263_v0 = vmul.f32 %v261_v49, %v260_v63 }
 0x14f   : > { %v266_v1 = vadd.f32 %v264_v53, %v263_v0 }
 0x151   : > { %268 = vst [vmem:[%s164_s30 + $0x8] sm:$0xff] %v266_v1 }
 0x152   : > { %448 = shalt.err (!%p445_p3)
}
 0x153   : > { %s485_s19 = smov 128   ;;  %s486_s26 = smov 8  }
 0x154   : > { %376 = dma.vmem_to_hbm [thread:$0]  (%p545_p5), %s283_s7, 256, %s285_s8, %s270_s16, %s485_s19, %s485_s19, %s486_s26  }
 0x155 PF: > { %p382_p4 = scmp.ge.s32.totalorder %s483_s15, 2  ;;  %s299_s27 = sand.u32 1, %s471_s12  }
 0x156   : > { %s300_s28 = scalar_lea.sflag [#allocation3], %s299_s27 }
 0x157   : > { %p379_p7 = pnand %p382_p4, %p549_p6 }
 0x159   : > { %p380_p8 = pneg %p379_p7 }
 0x15b   : > { %466 = dma.done.wait (%p380_p8), %s300_s28, 256  }
 0x15c   : > { %468 = vsyncadd (%p380_p8), %s300_s28, 4294967040  ;;  %p13_p9 = scmp.ge.s32.totalorder %s532_s18, 4   ;;  %s657_s12 = smov %s475_s13 }
 0x15d   : > { %s658_s13 = smov %s479_s14  ;;  %s659_s14 = smov %s543_s21 }
 0x15e   : > { %s660_s15 = smov %s532_s18  ;;  %15 = sbr.rel (!%p13_p9) target bundleno = 3 (0x3), region = 67 }
 0x163   :  { %306 = vsyncpa [#allocation3], 1 }
 0x164   :  { %308 = vsyncpa [#allocation3 + $0x1], 1 }

</bundles_post_ra>
